<compile_context>
chip_gen: v5e
topology: v5e:2x2
jax: 0.10.0
libtpu: 0.0.40
codegen_flags: <defaults>
</compile_context>

<pallas_src>
import functools

import jax
import jax.numpy as jnp
from jax import lax
from jax.experimental import pallas as pl
from jax.experimental.pallas import tpu as pltpu

P_DROP = 0.2
_KEEP_SCALE = 1.0 / (1.0 - P_DROP)
_DROP_THRESHOLD_INT = int(P_DROP * (2 ** 32))      # drop if hash(u32) < threshold
_GOLDEN = 0x9E3779B9


def _hash_u32(x):
    """Cheap stateless 32-bit mixer (murmur3-style finalizer). uint32 in/out."""
    x = x ^ (x >> 16)
    x = x * jnp.uint32(0x7FEB352D)
    x = x ^ (x >> 15)
    x = x * jnp.uint32(0x846CA68B)
    x = x ^ (x >> 16)
    return x


def _dropout_keep_mask(seed_u32, row_offset, shape):
    """Keep-mask for a (tm, H) tile whose first *global* row is `row_offset`.

    Depends only on (seed, global element index) -> identical results for any
    batch tiling, distinct randomness per tile.
    """
    tm, hdim = shape
    row = (lax.broadcasted_iota(jnp.int32, shape, 0) + row_offset).astype(jnp.uint32)
    col = lax.broadcasted_iota(jnp.int32, shape, 1).astype(jnp.uint32)
    elem = row * jnp.uint32(hdim) + col
    mixed = elem ^ (seed_u32 * jnp.uint32(_GOLDEN))
    return _hash_u32(mixed) >= jnp.uint32(_DROP_THRESHOLD_INT)


def autoencoder_kernel(seed_ref, x_ref, we_ref, be_ref, wd_ref, bd_ref,
                       xhat_ref, h_ref):
    compute_dtype = we_ref.dtype             # bf16 by default (MXU native)

    # ---- encoder: (tm, D) @ (D, H) on the MXU, f32 accumulation ----
    h = jnp.dot(x_ref[...].astype(compute_dtype), we_ref[...],
                preferred_element_type=jnp.float32)
    h = h + be_ref[...].astype(jnp.float32)

    # ---- dropout p=0.2 (inverted dropout; always active like the reference) ----
    tm, hdim = h.shape
    row_offset = pl.program_id(0) * tm        # global row of this batch tile
    seed_u32 = seed_ref[0].astype(jnp.uint32)
    keep = _dropout_keep_mask(seed_u32, row_offset, (tm, hdim))
    h_drop = jnp.where(keep, h * _KEEP_SCALE, 0.0)
    h_ref[...] = h_drop.astype(h_ref.dtype)

    # ---- decoder: (tm, H) @ (H, D) on the MXU, f32 accumulation ----
    xhat = jnp.dot(h_drop.astype(compute_dtype), wd_ref[...],
                   preferred_element_type=jnp.float32)
    xhat = xhat + bd_ref[...].astype(jnp.float32)
    xhat_ref[...] = xhat.astype(xhat_ref.dtype)


def prepare_params(we, be, wd, bd, param_dtype=jnp.bfloat16):
    """One-time parameter prep (NOT per forward call).

    Transposes PyTorch-layout (out, in) weights to (in, out) for x @ W and
    casts them to the MXU compute dtype; biases stay f32 (added post-acc).
    """
    return (
        jnp.asarray(we.T, dtype=param_dtype),               # We^T: (D, H)
        jnp.asarray(be, dtype=jnp.float32).reshape(1, -1),  # (1, H)
        jnp.asarray(wd.T, dtype=param_dtype),               # Wd^T: (H, D)
        jnp.asarray(bd, dtype=jnp.float32).reshape(1, -1),  # (1, D)
    )


@functools.partial(jax.jit, static_argnames=("block_batch",))
def autoencoder_forward(x, we_t, be, wd_t, bd, seed, *, block_batch=256):
    """x: (B, D) f32; we_t: (D, H); wd_t: (H, D); seed: traced int scalar."""
    B, D = x.shape
    H = we_t.shape[1]

    # Batch tile: full batch if small, otherwise block_batch rounded to a
    # multiple of 8 (sublane).  >=256 keeps the MXU M dimension well utilized.
    if B <= block_batch:
        tm = B
    else:
        tm = max(8, (block_batch // 8) * 8)
    grid = (pl.cdiv(B, tm),)

    seed_arr = jnp.asarray(seed, dtype=jnp.int32).reshape((1,))

    # VMEM budget: double-buffered activations + resident weights, clamped to
    # a range safe on v5e (16 MiB default scoped) .. v7x (64 MiB physical).
    w_itemsize = jnp.dtype(we_t.dtype).itemsize
    param_bytes = (we_t.size + wd_t.size) * w_itemsize + (be.size + bd.size) * 4
    act_bytes = tm * (2 * D + H) * 4
    vmem_limit = max(32 << 20, min(int(2 * (param_bytes + act_bytes)) + (4 << 20),
                                   48 << 20))

    cost = pl.CostEstimate(
        flops=4 * B * D * H,                 # two matmuls, 2*B*D*H each
        transcendentals=0,
        bytes_accessed=int(param_bytes
                           + B * D * x.dtype.itemsize        # x
                           + B * D * x.dtype.itemsize        # xhat
                           + B * H * x.dtype.itemsize))      # h

    grid_spec = pltpu.PrefetchScalarGridSpec(
        num_scalar_prefetch=1,               # seed lives in SMEM
        grid=grid,
        in_specs=[
            pl.BlockSpec((tm, D), lambda i, seed: (i, 0)),   # x tile
            # Constant index_maps: the same weight/bias blocks are reused for
            # every batch tile -> fetched once, resident in VMEM.
            pl.BlockSpec((D, H), lambda i, seed: (0, 0)),    # We^T
            pl.BlockSpec((1, H), lambda i, seed: (0, 0)),    # be
            pl.BlockSpec((H, D), lambda i, seed: (0, 0)),    # Wd^T
            pl.BlockSpec((1, D), lambda i, seed: (0, 0)),    # bd
        ],
        out_specs=[
            pl.BlockSpec((tm, D), lambda i, seed: (i, 0)),   # xhat tile
            pl.BlockSpec((tm, H), lambda i, seed: (i, 0)),   # h tile (post-dropout)
        ],
    )

    out_shape = (
        jax.ShapeDtypeStruct((B, D), x.dtype),
        jax.ShapeDtypeStruct((B, H), x.dtype),
    )

    return pl.pallas_call(
        autoencoder_kernel,
        out_shape=out_shape,
        grid_spec=grid_spec,
        compiler_params=pltpu.CompilerParams(
            dimension_semantics=("parallel",),   # batch tiles -> megacore on v7x
            vmem_limit_bytes=vmem_limit),
        cost_estimate=cost,
    )(seed_arr, x, we_t, be, wd_t, bd)


def reference_forward(x, we, be, wd, bd, seed, param_dtype=jnp.bfloat16):
    """Pure-JAX replica of the kernel semantics (bit-identical dropout mask)."""
    B, D = x.shape
    H = we.shape[0]
    we_t = we.T.astype(param_dtype).astype(jnp.float32)
    wd_t = wd.T.astype(param_dtype).astype(jnp.float32)
    xc = x.astype(param_dtype).astype(jnp.float32)
    h = xc @ we_t + be.reshape(1, H)
    row = jnp.arange(B, dtype=jnp.int32)[:, None].astype(jnp.uint32)
    col = jnp.arange(H, dtype=jnp.int32)[None, :].astype(jnp.uint32)
    elem = row * jnp.uint32(H) + col
    mixed = elem ^ (jnp.uint32(seed) * jnp.uint32(_GOLDEN))
    keep = _hash_u32(mixed) >= jnp.uint32(_DROP_THRESHOLD_INT)
    h_drop = jnp.where(keep, h * _KEEP_SCALE, 0.0)
    xhat = h_drop.astype(param_dtype).astype(jnp.float32) @ wd_t + bd.reshape(1, D)
    return xhat, h_drop


if __name__ == "__main__":
    # Small shapes consistent with the module (scaled-down hidden/input dims).
    B = 64            # batch (2 tiles of 32 -> exercises batch tiling)
    INPUT_DIM = 256   # stands in for 2048
    HIDDEN_DIM = 128  # stands in for 512

    key = jax.random.PRNGKey(0)
    kx, kwe, kbe, kwd, kbd = jax.random.split(key, 5)

    x = jax.random.normal(kx, (B, INPUT_DIM), dtype=jnp.float32)

    # Deterministic parameter init (uniform, ~ torch Linear default scale).
    bound_e = 1.0 / (INPUT_DIM ** 0.5)
    bound_d = 1.0 / (HIDDEN_DIM ** 0.5)
    we = jax.random.uniform(kwe, (HIDDEN_DIM, INPUT_DIM), jnp.float32,
                            -bound_e, bound_e)     # encoder.weight (out, in)
    be = jax.random.uniform(kbe, (HIDDEN_DIM,), jnp.float32,
                            -bound_e, bound_e)     # encoder.bias
    wd = jax.random.uniform(kwd, (INPUT_DIM, HIDDEN_DIM), jnp.float32,
                            -bound_d, bound_d)     # decoder.weight (out, in)
    bd = jax.random.uniform(kbd, (INPUT_DIM,), jnp.float32,
                            -bound_d, bound_d)     # decoder.bias

    # One-time prep: pre-transpose + cast to bf16 (outside the per-call path).
    params = prepare_params(we, be, wd, bd, param_dtype=jnp.bfloat16)

    ok = True
    h_prev = None
    for seed in (0, 123):   # traced seed -> second call does not recompile
        xhat, h = autoencoder_forward(x, *params, seed, block_batch=32)
        jax.block_until_ready((xhat, h))
        assert xhat.shape == (B, INPUT_DIM) and h.shape == (B, HIDDEN_DIM)

        ref_xhat, ref_h = reference_forward(x, we, be, wd, bd, seed,
                                            param_dtype=jnp.bfloat16)
        ok &= bool(jnp.allclose(h, ref_h, atol=2e-3, rtol=2e-3))
        ok &= bool(jnp.allclose(xhat, ref_xhat, atol=2e-3, rtol=2e-3))
        # roughly 20% of hidden units dropped
        drop_frac = float(jnp.mean(h == 0.0))
        ok &= 0.1 < drop_frac < 0.3
        # different seeds -> different dropout masks
        if h_prev is not None:
            ok &= bool(jnp.any((h == 0.0) != (h_prev == 0.0)))
        h_prev = h

    assert ok
    print("KERNEL_OK")
</pallas_src>

<mosaic_0001>
module attributes {stable_mosaic.version = 11 : i64} {
  func.func @autoencoder_kernel(%arg0: i32, %arg1: memref<1xi32, #tpu.memory_space<smem>>, %arg2: memref<32x256xf32, #tpu.memory_space<vmem>>, %arg3: memref<256x128xbf16, #tpu.memory_space<vmem>>, %arg4: memref<1x128xf32, #tpu.memory_space<vmem>>, %arg5: memref<128x256xbf16, #tpu.memory_space<vmem>>, %arg6: memref<1x256xf32, #tpu.memory_space<vmem>>, %arg7: memref<32x256xf32, #tpu.memory_space<vmem>>, %arg8: memref<32x128xf32, #tpu.memory_space<vmem>>) attributes {dimension_semantics = [#tpu.dimension_semantics<parallel>], iteration_bounds = array<i64: 2>, scalar_prefetch = 1 : i64, scratch_operands = 0 : i64, tpu.core_type = #tpu.core_type<tc>, window_params = [{transform_indices = @transform_0, window_bounds = array<i64: 32, 256>}, {pipeline_mode = #tpu.pipeline_mode<synchronous>, transform_indices = @transform_1, window_bounds = array<i64: 256, 128>}, {pipeline_mode = #tpu.pipeline_mode<synchronous>, transform_indices = @transform_2, window_bounds = array<i64: 1, 128>}, {pipeline_mode = #tpu.pipeline_mode<synchronous>, transform_indices = @transform_3, window_bounds = array<i64: 128, 256>}, {pipeline_mode = #tpu.pipeline_mode<synchronous>, transform_indices = @transform_4, window_bounds = array<i64: 1, 256>}, {transform_indices = @transform_5, window_bounds = array<i64: 32, 256>}, {transform_indices = @transform_6, window_bounds = array<i64: 32, 128>}]} {
    %c0 = arith.constant 0 : index
    %c0_0 = arith.constant 0 : index
    %0 = vector.load %arg2[%c0, %c0_0] : memref<32x256xf32, #tpu.memory_space<vmem>>, vector<32x256xf32>
    %1 = arith.truncf %0 : vector<32x256xf32> to vector<32x256xbf16>
    %c0_1 = arith.constant 0 : index
    %c0_2 = arith.constant 0 : index
    %2 = vector.load %arg3[%c0_1, %c0_2] : memref<256x128xbf16, #tpu.memory_space<vmem>>, vector<256x128xbf16>
    %cst = arith.constant dense<0.000000e+00> : vector<32x128xf32>
    %3 = tpu.matmul %1, %2, %cst {dimension_numbers = #tpu.dot_dimension_numbers<[1], [0], [0], [1], [0, 0, 1, 1], [], []>} : vector<32x256xbf16>, vector<256x128xbf16>, vector<32x128xf32> -> vector<32x128xf32>
    %c0_3 = arith.constant 0 : index
    %c0_4 = arith.constant 0 : index
    %4 = vector.load %arg4[%c0_3, %c0_4] : memref<1x128xf32, #tpu.memory_space<vmem>>, vector<1x128xf32>
    %5 = vector.broadcast %4 : vector<1x128xf32> to vector<32x128xf32>
    %6 = arith.addf %3, %5 : vector<32x128xf32>
    %c32_i32 = arith.constant 32 : i32
    %7 = arith.muli %arg0, %c32_i32 : i32
    %c0_5 = arith.constant 0 : index
    %8 = memref.load %arg1[%c0_5] : memref<1xi32, #tpu.memory_space<smem>>
    %9 = tpu.iota {dimensions = array<i32: 0>} : vector<32x128xi32>
    %10 = vector.broadcast %7 : i32 to vector<32x128xi32>
    %11 = arith.addi %9, %10 : vector<32x128xi32>
    %12 = tpu.iota {dimensions = array<i32: 1>} : vector<32x128xi32>
    %c128_i32 = arith.constant 128 : i32
    %13 = vector.broadcast %c128_i32 : i32 to vector<32x128xi32>
    %14 = arith.muli %11, %13 : vector<32x128xi32>
    %15 = arith.addi %14, %12 : vector<32x128xi32>
    %c-1640531527_i32 = arith.constant -1640531527 : i32
    %16 = arith.muli %8, %c-1640531527_i32 : i32
    %17 = vector.broadcast %16 : i32 to vector<32x128xi32>
    %18 = arith.xori %15, %17 : vector<32x128xi32>
    %c16_i32 = arith.constant 16 : i32
    %19 = vector.broadcast %c16_i32 : i32 to vector<32x128xi32>
    %20 = arith.shrui %18, %19 : vector<32x128xi32>
    %21 = arith.xori %18, %20 : vector<32x128xi32>
    %c2146121005_i32 = arith.constant 2146121005 : i32
    %22 = vector.broadcast %c2146121005_i32 : i32 to vector<32x128xi32>
    %23 = arith.muli %21, %22 : vector<32x128xi32>
    %c15_i32 = arith.constant 15 : i32
    %24 = vector.broadcast %c15_i32 : i32 to vector<32x128xi32>
    %25 = arith.shrui %23, %24 : vector<32x128xi32>
    %26 = arith.xori %23, %25 : vector<32x128xi32>
    %c-2073254261_i32 = arith.constant -2073254261 : i32
    %27 = vector.broadcast %c-2073254261_i32 : i32 to vector<32x128xi32>
    %28 = arith.muli %26, %27 : vector<32x128xi32>
    %c16_i32_6 = arith.constant 16 : i32
    %29 = vector.broadcast %c16_i32_6 : i32 to vector<32x128xi32>
    %30 = arith.shrui %28, %29 : vector<32x128xi32>
    %31 = arith.xori %28, %30 : vector<32x128xi32>
    %c858993459_i32 = arith.constant 858993459 : i32
    %32 = vector.broadcast %c858993459_i32 : i32 to vector<32x128xi32>
    %33 = arith.cmpi uge, %31, %32 : vector<32x128xi32>
    %cst_7 = arith.constant 1.250000e+00 : f32
    %34 = vector.broadcast %cst_7 : f32 to vector<32x128xf32>
    %35 = arith.mulf %6, %34 : vector<32x128xf32>
    %cst_8 = arith.constant 0.000000e+00 : f32
    %36 = vector.broadcast %cst_8 : f32 to vector<32x128xf32>
    %37 = arith.select %33, %35, %36 : vector<32x128xi1>, vector<32x128xf32>
    %c0_9 = arith.constant 0 : index
    %c0_10 = arith.constant 0 : index
    %38 = vector.load %arg8[%c0_9, %c0_10] : memref<32x128xf32, #tpu.memory_space<vmem>>, vector<32x128xf32>
    tpu.vector_store %arg8[%c0_9, %c0_10], %37 {strides = array<i32>} : memref<32x128xf32, #tpu.memory_space<vmem>>, vector<32x128xf32>,
    %39 = arith.truncf %37 : vector<32x128xf32> to vector<32x128xbf16>
    %c0_11 = arith.constant 0 : index
    %c0_12 = arith.constant 0 : index
    %40 = vector.load %arg5[%c0_11, %c0_12] : memref<128x256xbf16, #tpu.memory_space<vmem>>, vector<128x256xbf16>
    %cst_13 = arith.constant dense<0.000000e+00> : vector<32x256xf32>
    %41 = tpu.matmul %39, %40, %cst_13 {dimension_numbers = #tpu.dot_dimension_numbers<[1], [0], [0], [1], [0, 0, 1, 1], [], []>} : vector<32x128xbf16>, vector<128x256xbf16>, vector<32x256xf32> -> vector<32x256xf32>
    %c0_14 = arith.constant 0 : index
    %c0_15 = arith.constant 0 : index
    %42 = vector.load %arg6[%c0_14, %c0_15] : memref<1x256xf32, #tpu.memory_space<vmem>>, vector<1x256xf32>
    %43 = vector.broadcast %42 : vector<1x256xf32> to vector<32x256xf32>
    %44 = arith.addf %41, %43 : vector<32x256xf32>
    %c0_16 = arith.constant 0 : index
    %c0_17 = arith.constant 0 : index
    %45 = vector.load %arg7[%c0_16, %c0_17] : memref<32x256xf32, #tpu.memory_space<vmem>>, vector<32x256xf32>
    tpu.vector_store %arg7[%c0_16, %c0_17], %44 {strides = array<i32>} : memref<32x256xf32, #tpu.memory_space<vmem>>, vector<32x256xf32>,
    return
  }
  func.func @transform_0(%arg0: i32, %arg1: memref<1xi32, #tpu.memory_space<smem>>) -> (i32, i32) {
    %c0_i32 = arith.constant 0 : i32
    %c0_i32_0 = arith.constant 0 : i32
    return %arg0, %c0_i32 : i32, i32
  }
  func.func @transform_1(%arg0: i32, %arg1: memref<1xi32, #tpu.memory_space<smem>>) -> (i32, i32) {
    %c0_i32 = arith.constant 0 : i32
    %c0_i32_0 = arith.constant 0 : i32
    %c0_i32_1 = arith.constant 0 : i32
    return %c0_i32, %c0_i32_0 : i32, i32
  }
  func.func @transform_2(%arg0: i32, %arg1: memref<1xi32, #tpu.memory_space<smem>>) -> (i32, i32) {
    %c0_i32 = arith.constant 0 : i32
    %c0_i32_0 = arith.constant 0 : i32
    %c0_i32_1 = arith.constant 0 : i32
    return %c0_i32, %c0_i32_0 : i32, i32
  }
  func.func @transform_3(%arg0: i32, %arg1: memref<1xi32, #tpu.memory_space<smem>>) -> (i32, i32) {
    %c0_i32 = arith.constant 0 : i32
    %c0_i32_0 = arith.constant 0 : i32
    %c0_i32_1 = arith.constant 0 : i32
    return %c0_i32, %c0_i32_0 : i32, i32
  }
  func.func @transform_4(%arg0: i32, %arg1: memref<1xi32, #tpu.memory_space<smem>>) -> (i32, i32) {
    %c0_i32 = arith.constant 0 : i32
    %c0_i32_0 = arith.constant 0 : i32
    %c0_i32_1 = arith.constant 0 : i32
    return %c0_i32, %c0_i32_0 : i32, i32
  }
  func.func @transform_5(%arg0: i32, %arg1: memref<1xi32, #tpu.memory_space<smem>>) -> (i32, i32) {
    %c0_i32 = arith.constant 0 : i32
    %c0_i32_0 = arith.constant 0 : i32
    return %arg0, %c0_i32 : i32, i32
  }
  func.func @transform_6(%arg0: i32, %arg1: memref<1xi32, #tpu.memory_space<smem>>) -> (i32, i32) {
    %c0_i32 = arith.constant 0 : i32
    %c0_i32_0 = arith.constant 0 : i32
    return %arg0, %c0_i32 : i32, i32
  }
}

</mosaic_0001>

<bundles_post_ra>
// kernel: autoencoder_forward.1
= control target key start
LH: loop header
LB: loop body
LE: loop exit
PB: predicated region body
PF: predicated region fallthrough
CT: control target
= control target key end

     0   :  { %s1644_s0 = inlined_call_operand.<no memory space> [shape: s32[1], index: 0, kind: input, shape index: {}]   ;;  %s1645_s1 = inlined_call_operand.hbm [shape: f32[64,256], index: 1, kind: input, shape index: {}]   ;;  %s1646_s2 = inlined_call_operand.hbm [shape: bf16[256,128], index: 2, kind: input, shape index: {}]   ;;  %s1647_s3 = inlined_call_operand.vmem [shape: f32[1,128], index: 3, kind: input, shape index: {}]   ;;  %s1648_s4 = inlined_call_operand.hbm [shape: bf16[128,256], index: 4, kind: input, shape index: {}]   ;;  %s1649_s5 = inlined_call_operand.vmem [shape: f32[1,256], index: 5, kind: input, shape index: {}]   ;;  %s1650_s6 = inlined_call_operand.hbm [shape: f32[64,256], index: 6, kind: output, shape index: {0}]   ;;  %s1651_s7 = inlined_call_operand.hbm [shape: f32[64,128], index: 7, kind: output, shape index: {1}]  }
   0x1   :  { %1653 = sst [smem:[#allocation17_spill]] %s1645_s1 }
   0x2   :  { %13 = sst [smem:[#allocation3]] %s1644_s0 }
   0x3   :  { %14 = vsyncpa [#allocation5], 0 }
   0x4   :  { %16 = vsyncpa [#allocation5 + $0x1], 0 }
   0x5   :  { %17 = vsyncpa [#allocation8], 0 }
   0x6   :  { %18 = vsyncpa [#allocation6], 0 }
   0x7   :  { %20 = vsyncpa [#allocation6 + $0x1], 0 }
   0x8   :  { %21 = vsyncpa [#allocation12], 0 }
   0x9   :  { %23 = vsyncpa [#allocation12 + $0x1], 0  ;;  %s1440_s26 = smov 0   ;;  %s1442_s27 = smov 0  }
   0xa   :  { %s1444_s28 = smov 0   ;;  %s1446_s29 = smov 0  }
   0xb LB: > { %s1461_s0 = sadd.s32 4294967295, %s1383_s29   ;;  %s902_s30 = sadd.s32 4294967294, %s1383_s29   ;;  %s1383_s29 = sphi %s1446_s29, %s1669_s29   ;;  %s1379_s28 = sphi %s1444_s28, %s1668_s28   ;;  %s1375_s27 = sphi %s1442_s27, %s1667_s27   ;;  %s1371_s26 = sphi %s1440_s26, %s1666_s26  }
   0xc   : > { %p49_p0 = scmp.ne.s32.totalorder %s1375_s27, %s1371_s26  ;;  %p50_p1 = scmp.eq.s32.totalorder %s1461_s0, 0 }
   0xd   : > { %p157_p2 = scmp.eq.s32.totalorder %s1461_s0, 1  ;;  %p163_p3 = scmp.eq.s32.totalorder %s902_s30, 1 }
   0xe   : > { %p1470_p4 = por %p50_p1, %p49_p0  ;;  %p903_p5 = scmp.ge.s32.totalorder %s1383_s29, 1 }
   0xf   : > { %p1475_p6 = por %p163_p3, %p49_p0  ;;  %p196_p7 = scmp.lt.s32.totalorder %s1383_s29, 3 }
  0x10   : > { %s207_s12 = sshll.u32 %s1646_s2, 4  ;;  %s1385_s14 = smov [#allocation7]   ;;  %s208_s12 = int_to_ptr.hbm [resolvable:$true] %s207_s12 }
  0x11   : > { %p1483_p8 = pnand %p903_p5, %p196_p7  ;;  %s209_s15 = sshll.u32 %s1385_s14, 4  ;;  %s210_s15 = int_to_ptr.vmem [resolvable:$true] %s209_s15 }
  0x12   : > { %s224_s18 = sshll.u32 %s1648_s4, 4  ;;  %s1386_s19 = smov 64   ;;  %s225_s18 = int_to_ptr.hbm [resolvable:$true] %s224_s18 }
  0x13   : > { %p1122_p9 = pneg %p1483_p8  ;;  %s1387_s20 = smov 4  }
  0x14   : > { %s1388_s21 = smov [#allocation9]   ;;  %s1389_s23 = smov 128  }
  0x15   : > { %p1123_p10 = pnand %p1122_p9, %p50_p1  ;;  %s226_s22 = sshll.u32 %s1388_s21, 4  ;;  %s227_s22 = int_to_ptr.vmem [resolvable:$true] %s226_s22 }
  0x16   : > { %s1390_s24 = smov 8   ;;  %s1496_s25 = sadd.s32 1, %s1383_s29  }
  0x17   : > { %1125 = dma.hbm_to_vmem [thread:$0]  (!%p1123_p10), %s208_s12, 2048, %s210_s15, [#allocation8], %s1386_s19, %s1386_s19, %s1387_s20  }
  0x18   : > { %1128 = dma.hbm_to_vmem [thread:$0]  (!%p1123_p10), %s225_s18, 2048, %s227_s22, [#allocation8], %s1389_s23, %s1389_s23, %s1390_s24  }
  0x19   : > { %s33_s30 = ssub.s32 %s1383_s29, %s1496_s25  ;;  %s36_s10 = sadd.s32 1, %s1379_s28 }
  0x1a   : > { %p34_p12 = scmp.eq.s32.totalorder %s33_s30, 0  ;;  %p43_p13 = scmp.ne.s32.totalorder %s1379_s28, %s1375_s27 }
  0x1b   : > { %p44_p0 = scmp.eq.s32.totalorder %s1383_s29, 0  ;;  %p1142_p7 = scmp.lt.s32.totalorder %s1383_s29, 2 }
  0x1c   : > { %s1505_s11 = scalar_select %p34_p12, %s1379_s28, %s36_s10  }
  0x1d   : > { %p45_p3 = por %p44_p0, %p43_p13  ;;  %p1509_p5 = por %p157_p2, %p43_p13 }
  0x1e   : > { %s243_s14 = sand.u32 1, %s1379_s28   ;;  %s1072_s16 = sshll.u32 %s1383_s29, 6 }
  0x1f   : > { %s907_s15 = sshll.u32 %s243_s14, 6  ;;  %s1658_s1 = sld [smem:[#allocation17_spill]] }
  0x20   : > { %s247_s20 = scalar_lea.vmem [#allocation4], %s907_s15  ;;  %p1519_p9 = pnand %p1142_p7, %p45_p3 }
  0x21   : > { %s256_s21 = sshll.u32 %s247_s20, 4  ;;  %s244_s24 = scalar_lea.sflag [#allocation5], %s243_s14  ;;  %s257_s21 = int_to_ptr.vmem [resolvable:$true] %s256_s21 }
  0x22   : > { %p1255_p10 = pneg %p1519_p9 }
  0x25   : > { %s253_s19 = scalar_lea.hbm %s1658_s1, %s1072_s16  ;;  %s1258_s17 = scalar_lea.hbm %s1658_s1, 128 }
  0x26   : > { %s254_s22 = sshll.u32 %s253_s19, 4  ;;  %s255_s22 = int_to_ptr.hbm [resolvable:$true] %s254_s22 }
  0x27   : > { %s1251_s30 = sshra.s32 %s255_s22, 4  ;;  %s1252_s30 = int_to_ptr.hbm [resolvable:$true] %s1251_s30 }
  0x28   : > { %s1253_s10 = scalar_lea.hbm %s1252_s30, 64  ;;  %p1259_p0 = scmp.lt.s32.totalorder %s1252_s30, %s1658_s1 }
  0x29   : > { %p1254_p2 = scmp.ne.s32.totalorder %s1252_s30, %s1253_s10  ;;  %p1260_p3 = scmp.lt.s32.totalorder %s1258_s17, %s1253_s10 }
  0x2b   : > { %p1256_p12 = pnand %p1255_p10, %p1254_p2  ;;  %p1261_p7 = por %p1260_p3, %p1259_p0 }
  0x2d   : > { %p1257_p13 = pneg %p1256_p12 }
  0x2f   : > { %p1262_p11 = pnand %p1261_p7, %p1257_p13 }
  0x31   : > { %1265 = shalt.err (!%p1262_p11)
}
  0x32   : > { %s1391_s14 = smov 256   ;;  %s1392_s20 = smov 16  }
  0x33   : > { %1132 = dma.hbm_to_vmem [thread:$0]  (!%p1519_p9), %s255_s22, 1024, %s257_s21, %s244_s24, %s1391_s14, %s1391_s14, %s1392_s20  }
  0x34   : > { %268 = sbr.rel (%p1483_p8) target bundleno = 397 (0x18d), region = 40  ;;  %s1536_s16 = sand.u32 (!%p1483_p8), 1, %s1375_s27  }
  0x35   : > { %s1652_s30 = sshll.u32 (!%p1483_p8), %s1536_s16, 6  ;;  %s271_s10 = scalar_lea.sflag (!%p1483_p8), [#allocation5], %s1536_s16 }
  0x36   : > { %s1542_s15 = scalar_lea.vmem (!%p1483_p8), [#allocation4], %s1652_s30 }
  0x39   : > { %1354 = dma.done.wait (%p1470_p4), %s271_s10, 1024  }
  0x3a   : > { %1356 = vsyncadd (%p1470_p4), %s271_s10, 4294966272 }
  0x3b   : > { %1358 = dma.done.wait (%p50_p1), [#allocation8], 4096  }
  0x3c   : > { %1360 = vsyncadd (%p50_p1), [#allocation8], 4294963200  ;;  %v1080_v0 = vld [vmem:[#allocation7 + $0x38] sm:$0xff]  ;;  %v1079_v2 = vld [vmem:[#allocation7 + $0x30] sm:$0xff]  ;;  %v506_v52 = vlaneseq  ;;  %s981_s8 = sshll.u32 %s1461_s0, 5  ;;  %s505_s13 = sld [smem:[#allocation3]] }
  0x3d   : > { %v1088_v1 = vld [vmem:[#allocation7 + $0x78] sm:$0xff]  ;;  %466 = vmatpush.bf16.msra.mxu0 %v1080_v0  ;;  %v1087_v3 = vld [vmem:[#allocation7 + $0x70] sm:$0xff]  ;;  %v1078_v4 = vld [vmem:[#allocation7 + $0x28] sm:$0xff]  ;;  %v511_v54 = vstv %s981_s8  ;;  %s916_s24 = sshll.u32 %s1536_s16, 5  ;;  %s773_s14 = scalar_lea.hbm %s1651_s7, %s981_s8 }
  0x3e   : > { %485 = vmatpush.bf16.msra.mxu1 %v1088_v1  ;;  %v1086_v5 = vld [vmem:[#allocation7 + $0x68] sm:$0xff]  ;;  %v1077_v6 = vld [vmem:[#allocation7 + $0x20] sm:$0xff]  ;;  %v1076_v8 = vld [vmem:[#allocation7 + $0x18] sm:$0xff]  ;;  %v507_v53 = vshrl.u32 %v506_v52, 7  ;;  %v517_v57 = vand.u32 127, %v506_v52  ;;  %s1573_s17 = scalar_lea.vmem [#allocation11], %s916_s24 }
  0x3f   : > { %v1085_v7 = vld [vmem:[#allocation7 + $0x60] sm:$0xff]  ;;  %v1084_v9 = vld [vmem:[#allocation7 + $0x58] sm:$0xff]  ;;  %v1075_v10 = vld [vmem:[#allocation7 + $0x10] sm:$0xff]  ;;  %s774_s20 = sshll.u32 %s1573_s17, 4  ;;  %s776_s10 = sshll.u32 %s773_s14, 4  ;;  %s775_s20 = int_to_ptr.vmem [resolvable:$true] %s774_s20  ;;  %s777_s10 = int_to_ptr.hbm [resolvable:$true] %s776_s10 }
  0x40   : > { %v1083_v11 = vld [vmem:[#allocation7 + $0x50] sm:$0xff]  ;;  %v1104_v13 = vld [vmem:[#allocation9 + $0x74] sm:$0xf0]  ;;  %v1046_v16 = vld [vmem:[#allocation9 + $0x78] sm:$0xf0]  ;;  %v512_v55 = vadd.s32 %v511_v54, %v507_v53  ;;  %v508_v56 = vadd.s32 8, %v507_v53 }
  0x41   : > { %467 = vmatpush.bf16.msra.mxu0 %v1079_v2  ;;  %v1044_v12 = vld [vmem:[#allocation9 + $0x70] sm:$0xf]  ;;  %v1103_v14 = vld [vmem:[#allocation9 + $0x74] sm:$0xf]  ;;  %v1036_v17 = vld [vmem:[#allocation9 + $0x60] sm:$0xf] }
  0x42   : > { %486 = vmatpush.bf16.msra.mxu1 %v1087_v3  ;;  %v1045_v15 = vor.u32 %v1104_v13, %v1044_v12  ;;  %v1102_v18 = vld [vmem:[#allocation9 + $0x64] sm:$0xf0]  ;;  %v1049_v19 = vor.u32 %v1103_v14, %v1046_v16  ;;  %v1101_v20 = vld [vmem:[#allocation9 + $0x64] sm:$0xf]  ;;  %v1038_v21 = vld [vmem:[#allocation9 + $0x68] sm:$0xf0]  ;;  %v513_v59 = vadd.s32 %v511_v54, %v508_v56 }
  0x43   : > { %v1037_v22 = vor.u32 %v1102_v18, %v1036_v17  ;;  %v1074_v23 = vld [vmem:[#allocation7 + $0x8] sm:$0xff]  ;;  %v1041_v24 = vor.u32 %v1101_v20, %v1038_v21  ;;  %v1028_v25 = vld [vmem:[#allocation9 + $0x50] sm:$0xf]  ;;  %v1100_v26 = vld [vmem:[#allocation9 + $0x54] sm:$0xf0]  ;;  %v518_v58 = vmul.u32 128, %v512_v55 }
  0x44   : > { %692 = vmatpush.bf16.msra.mxu2 %v1045_v15  ;;  %711 = vmatpush.bf16.msra.mxu3 %v1049_v19  ;;  %v1082_v27 = vld [vmem:[#allocation7 + $0x48] sm:$0xff]  ;;  %v1099_v28 = vld [vmem:[#allocation9 + $0x54] sm:$0xf]  ;;  %v1030_v29 = vld [vmem:[#allocation9 + $0x58] sm:$0xf0]  ;;  %v1029_v32 = vor.u32 %v1100_v26, %v1028_v25  ;;  %v519_v62 = vmul.u32 128, %v513_v59 }
  0x45   : > { %468 = vmatpush.bf16.msra.mxu0 %v1078_v4  ;;  %v1073_v30 = vld [vmem:[#allocation7] sm:$0xff]  ;;  %v1033_v34 = vor.u32 %v1099_v28, %v1030_v29  ;;  %v1098_v36 = vld [vmem:[#allocation9 + $0x44] sm:$0xf0]  ;;  %v324_v37 = vld [vmem:[%s1542_s15 + $0x10] sm:$0xff]  ;;  %s526_s21 = smul.u32 2654435769, %s505_s13  ;;  %v522_v60 = vadd.s32 %v518_v58, %v517_v57 }
  0x46   : > { %487 = vmatpush.bf16.msra.mxu1 %v1086_v5  ;;  %v1081_v31 = vld [vmem:[#allocation7 + $0x40] sm:$0xff]  ;;  %v323_v38 = vld [vmem:[%s1542_s15 + $0x8] sm:$0xff]  ;;  %v325_v39 = vld [vmem:[%s1542_s15 + $0x18] sm:$0xff]  ;;  %v509_v0 = vadd.s32 16, %v507_v53  ;;  %v523_v1 = vadd.s32 %v519_v62, %v517_v57  ;;  %s1295_s13 = sshra.s32 %s777_s10, 4  ;;  %s1301_s24 = scalar_lea.hbm %s1651_s7, 64  ;;  %s1296_s13 = int_to_ptr.hbm [resolvable:$true] %s1295_s13 }
  0x47   : > { %v322_v33 = vld [vmem:[%s1542_s15] sm:$0xff]  ;;  %v1022_v41 = vld [vmem:[#allocation9 + $0x48] sm:$0xf0]  ;;  %v331_v44 = vpack.c.bf16 %v325_v39, %v323_v38  ;;  %v328_v47 = vld [vmem:[%s1542_s15 + $0x30] sm:$0xff]  ;;  %v527_v61 = vstv %s526_s21  ;;  %s1297_s21 = scalar_lea.hbm %s1296_s13, 32  ;;  %p1302_p11 = scmp.lt.s32.totalorder %s1296_s13, %s1651_s7 }
  0x48   : > { %693 = vmatpush.bf16.msra.mxu2 %v1037_v22  ;;  %712 = vmatpush.bf16.msra.mxu3 %v1041_v24  ;;  %v1020_v35 = vld [vmem:[#allocation9 + $0x40] sm:$0xf]  ;;  %v1097_v40 = vld [vmem:[#allocation9 + $0x44] sm:$0xf]  ;;  %v330_v43 = vpack.c.bf16 %v324_v37, %v322_v33  ;;  %v327_v48 = vld [vmem:[%s1542_s15 + $0x28] sm:$0xff]  ;;  %v528_v63 = vxor.u32 %v527_v61, %v522_v60  ;;  %p1298_p1 = scmp.ne.s32.totalorder %s1296_s13, %s1297_s21  ;;  %p1303_p9 = scmp.lt.s32.totalorder %s1301_s24, %s1297_s21 }
  0x49   : > { %469 = vmatpush.bf16.msra.mxu0 %v1077_v6  ;;  %v1021_v42 = vor.u32 %v1098_v36, %v1020_v35  ;;  %v1025_v45 = vor.u32 %v1097_v40, %v1022_v41  ;;  %v326_v46 = vld [vmem:[%s1542_s15 + $0x20] sm:$0xff]  ;;  %v329_v49 = vld [vmem:[%s1542_s15 + $0x38] sm:$0xff]  ;;  %v1012_v2 = vld [vmem:[#allocation9 + $0x30] sm:$0xf]  ;;  %s744_s15 = scalar_lea.sflag [#allocation12], %s1536_s16 }
  0x4a   : > { %488 = vmatpush.bf16.msra.mxu1 %v1085_v7  ;;  %v332_v50 = vpack.c.bf16 %v328_v47, %v326_v46  ;;  %v333_v51 = vpack.c.bf16 %v329_v49, %v327_v48  ;;  %v1096_v3 = vld [vmem:[#allocation9 + $0x34] sm:$0xf0]  ;;  %v1095_v4 = vld [vmem:[#allocation9 + $0x34] sm:$0xf]  ;;  %v1014_v6 = vld [vmem:[#allocation9 + $0x38] sm:$0xf0]  ;;  %p1299_p4 = pnand %p1298_p1, %p1509_p5  ;;  %p1304_p2 = por %p1303_p9, %p1302_p11 }
  0x4b   : > { %v1013_v5 = vor.u32 %v1096_v3, %v1012_v2  ;;  %v532_v7 = vshrl.u32 %v528_v63, 16  ;;  %v1004_v12 = vld [vmem:[#allocation9 + $0x20] sm:$0xf]  ;;  %v1094_v13 = vld [vmem:[#allocation9 + $0x24] sm:$0xf0] }
  0x4c   : > { %694 = vmatpush.bf16.msra.mxu2 %v1029_v32  ;;  %713 = vmatpush.bf16.msra.mxu3 %v1033_v34  ;;  %v1093_v14 = vld [vmem:[#allocation9 + $0x24] sm:$0xf]  ;;  %v1005_v15 = vor.u32 %v1094_v13, %v1004_v12  ;;  %v1006_v16 = vld [vmem:[#allocation9 + $0x28] sm:$0xf0]  ;;  %v996_v22 = vld [vmem:[#allocation9 + $0x10] sm:$0xf]  ;;  %p1300_p8 = pneg %p1299_p4 }
  0x4d   : > { %470 = vmatpush.bf16.msra.mxu0 %v1076_v8  ;;  %v514_v8 = vadd.s32 %v511_v54, %v509_v0  ;;  %v536_v17 = vxor.u32 %v532_v7, %v528_v63  ;;  %v1009_v19 = vor.u32 %v1093_v14, %v1006_v16  ;;  %v1091_v24 = vld [vmem:[#allocation9 + $0x14] sm:$0xf]  ;;  %v998_v26 = vld [vmem:[#allocation9 + $0x18] sm:$0xf0]  ;;  %v1090_v32 = vld [vmem:[#allocation9 + $0x4] sm:$0xf0] }
  0x4e   : > { %489 = vmatpush.bf16.msra.mxu1 %v1084_v9  ;;  %v1017_v9 = vor.u32 %v1095_v4, %v1014_v6  ;;  %v1001_v29 = vor.u32 %v1091_v24, %v998_v26  ;;  %v1089_v33 = vld [vmem:[#allocation9 + $0x4] sm:$0xf]  ;;  %v990_v36 = vld [vmem:[#allocation9 + $0x8] sm:$0xf0]  ;;  %v1190_v56 = vld [vmem:[%s1647_s3] ss:$0 sm:$0xff]  ;;  %p1305_p10 = pnand %p1304_p2, %p1300_p8 }
  0x4f   : > { %v520_v18 = vmul.u32 128, %v514_v8  ;;  %v993_v39 = vor.u32 %v1089_v33, %v990_v36 }
  0x50   : > { %695 = vmatpush.bf16.msra.mxu2 %v1021_v42  ;;  %714 = vmatpush.bf16.msra.mxu3 %v1025_v45 }
  0x51   : > { %471 = vmatpush.bf16.msra.mxu0 %v1075_v10  ;;  %v529_v10 = vxor.u32 %v527_v61, %v523_v1  ;;  %v524_v28 = vadd.s32 %v520_v18, %v517_v57 }
  0x52   : > { %490 = vmatpush.bf16.msra.mxu1 %v1083_v11  ;;  %v510_v11 = vadd.s32 24, %v507_v53 }
  0x53   : > { %v533_v20 = vshrl.u32 %v529_v10, 16  ;;  %v530_v38 = vxor.u32 %v527_v61, %v524_v28 }
  0x54   : > { %696 = vmatpush.bf16.msra.mxu2 %v1013_v5  ;;  %715 = vmatpush.bf16.msra.mxu3 %v1017_v9  ;;  %v515_v21 = vadd.s32 %v511_v54, %v510_v11 }
  0x55   : > { %472 = vmatpush.bf16.msra.mxu0 %v1074_v23  ;;  %v1092_v23 = vld [vmem:[#allocation9 + $0x14] sm:$0xf0]  ;;  %v537_v34 = vxor.u32 %v533_v20, %v529_v10 }
  0x56   : > { %491 = vmatpush.bf16.msra.mxu1 %v1082_v27  ;;  %v997_v25 = vor.u32 %v1092_v23, %v996_v22  ;;  %v540_v27 = vmul.u32 2146121005, %v536_v17 }
  0x57   : > { %v541_v40 = vmul.u32 2146121005, %v537_v34 }
  0x58   : > { %697 = vmatpush.bf16.msra.mxu2 %v1005_v15  ;;  %716 = vmatpush.bf16.msra.mxu3 %v1009_v19  ;;  %v544_v37 = vshrl.u32 %v540_v27, 15 }
  0x59   : > { %473 = vmatpush.bf16.msra.mxu0 %v1073_v30  ;;  %v521_v30 = vmul.u32 128, %v515_v21 }
  0x5a   : > { %492 = vmatpush.bf16.msra.mxu1 %v1081_v31  ;;  %v988_v31 = vld [vmem:[#allocation9] sm:$0xf]  ;;  %v548_v42 = vxor.u32 %v544_v37, %v540_v27 }
  0x5b   : > { %v989_v35 = vor.u32 %v1090_v32, %v988_v31  ;;  %v525_v41 = vadd.s32 %v521_v30, %v517_v57 }
  0x5c   : > { %474 = vmatmul.bf16.vlgmr.msra.gmra.mxu0 %v330_v43  ;;  %698 = vmatpush.bf16.msra.mxu2 %v997_v25  ;;  %v534_v43 = vshrl.u32 %v530_v38, 16  ;;  %v552_v46 = vmul.u32 2221713035, %v548_v42 }
  0x5d   : > { %493 = vmatmul.bf16.vlgmr.msra.gmra.mxu1 %v331_v44  ;;  %717 = vmatpush.bf16.msra.mxu3 %v1001_v29  ;;  %v545_v44 = vshrl.u32 %v541_v40, 15  ;;  %v531_v45 = vxor.u32 %v527_v61, %v525_v41 }
  0x5e   : > { %v538_v47 = vxor.u32 %v534_v43, %v530_v38 }
  0x5f   : > { %v549_v48 = vxor.u32 %v545_v44, %v541_v40  ;;  %v535_v49 = vshrl.u32 %v531_v45, 16 }
  0x60   : > { %699 = vmatpush.bf16.msra.mxu2 %v989_v35 }
  0x61   : > { %718 = vmatpush.bf16.msra.mxu3 %v993_v39  ;;  %v553_v52 = vmul.u32 2221713035, %v549_v48  ;;  %v539_v53 = vxor.u32 %v535_v49, %v531_v45 }
  0x63   : > { %v557_v57 = vshrl.u32 %v553_v52, 16  ;;  %v543_v58 = vmul.u32 2146121005, %v539_v53 }
  0x65   : > { %v561_v1 = vxor.u32 %v557_v57, %v553_v52  ;;  %v547_v2 = vshrl.u32 %v543_v58, 15 }
  0x67   : > { %v983_v6 = vxor.u32 2147483648, %v561_v1  ;;  %v551_v8 = vxor.u32 %v547_v2, %v543_v58 }
  0x69   : > { %vm569_vm1 = vcmp.ge.s32.totalorder %v983_v6, 3006477107  ;;  %v555_v14 = vmul.u32 2221713035, %v551_v8 }
  0x6b   : > { %v559_v19 = vshrl.u32 %v555_v14, 16 }
  0x6c   : > { %479 = vmatmul.bf16.gmra.mxu0 %v332_v50  ;;  %v556_v50 = vshrl.u32 %v552_v46, 16 }
  0x6d   : > { %498 = vmatmul.bf16.gmra.mxu1 %v333_v51  ;;  %v542_v51 = vmul.u32 2146121005, %v538_v47  ;;  %v563_v25 = vxor.u32 %v559_v19, %v555_v14 }
  0x6e   : > { %v560_v54 = vxor.u32 %v556_v50, %v552_v46 }
  0x6f   : > { %v546_v55 = vshrl.u32 %v542_v51, 15  ;;  %v985_v28 = vxor.u32 2147483648, %v563_v25 }
  0x70   : > { %v982_v61 = vxor.u32 2147483648, %v560_v54 }
  0x71   : > { %v550_v62 = vxor.u32 %v546_v55, %v542_v51  ;;  %vm575_vm4 = vcmp.ge.s32.totalorder %v985_v28, 3006477107 }
  0x72   : > { %vm1567_vm0 = vcmp.ge.s32.totalorder %v982_v61, 3006477107 }
  0x73   : > { %v554_v4 = vmul.u32 2221713035, %v550_v62  ;;  %vm1050_vm2 = vmpackc.low %vm569_vm1, %vm1567_vm0 }
  0x75   : > { %v558_v11 = vshrl.u32 %v554_v4, 16 }
  0x77   : > { %v562_v15 = vxor.u32 %v558_v11, %v554_v4 }
  0x79   : > { %v984_v22 = vxor.u32 2147483648, %v562_v15 }
  0x7b   : > { %vm1579_vm3 = vcmp.ge.s32.totalorder %v984_v22, 3006477107 }
  0x7c   : > { %vm1053_vm5 = vmpackc.low %vm575_vm4, %vm1579_vm3 }
  0xd9   : > { %v475_v59 = vpop.f32.mrf.mxu0 }
  0xda   : > { %v494_v60 = vpop.f32.mrf.mxu1  ;;  %v476_v63 = vadd.f32 %v1190_v56, %v475_v59 }
  0xdc   : > { %v495_v0 = vadd.f32 %v494_v60, %v476_v63 }
  0xde   : > { %v576_v5 = vmul.f32 1.25, %v495_v0 }
  0xe0   : > { %v580_v7 = vsel %vm1567_vm0, %v576_v5, 0.0 }
  0xe1   : > { %v477_v9 = vpop.f32.mrf.mxu0  ;;  %584 = vst [vmem:[%s1573_s17] sm:$0xff] %v580_v7 }
  0xe2   : > { %v496_v10 = vpop.f32.mrf.mxu1  ;;  %v478_v12 = vadd.f32 %v1190_v56, %v477_v9 }
  0xe4   : > { %v497_v13 = vadd.f32 %v496_v10, %v478_v12 }
  0xe6   : > { %v577_v16 = vmul.f32 1.25, %v497_v13 }
  0xe8   : > { %v1051_v17 = vpack.c.bf16 %v577_v16, %v576_v5  ;;  %v581_v18 = vsel %vm569_vm1, %v577_v16, 0.0 }
  0xe9   : > { %v480_v20 = vpop.f32.mrf.mxu0  ;;  %585 = vst [vmem:[%s1573_s17 + $0x8] sm:$0xff] %v581_v18 }
  0xea   : > { %v499_v21 = vpop.f32.mrf.mxu1  ;;  %v481_v23 = vadd.f32 %v1190_v56, %v480_v20  ;;  %1052 = vmatmul.msk.bf16.vlgmr.msra.gmra.mxu2 %vm1050_vm2, %v1051_v17  ;;  %1058 = vmatmul.msk.bf16.vlgmr.msra.gmra.mxu3 %vm1050_vm2, %v1051_v17 }
  0xec   : > { %v500_v24 = vadd.f32 %v499_v21, %v481_v23 }
  0xee   : > { %v578_v27 = vmul.f32 1.25, %v500_v24 }
  0xf0   : > { %v582_v29 = vsel %vm1579_vm3, %v578_v27, 0.0 }
  0xf1   : > { %v482_v30 = vpop.f32.mrf.mxu0  ;;  %586 = vst [vmem:[%s1573_s17 + $0x10] sm:$0xff] %v582_v29 }
  0xf2   : > { %v483_v31 = vadd.f32 %v1190_v56, %v482_v30  ;;  %v501_v32 = vpop.f32.mrf.mxu1 }
  0xf4   : > { %v502_v33 = vadd.f32 %v501_v32, %v483_v31 }
  0xf6   : > { %v579_v34 = vmul.f32 1.25, %v502_v33 }
  0xf8   : > { %v1054_v35 = vpack.c.bf16 %v579_v34, %v578_v27  ;;  %v583_v36 = vsel %vm575_vm4, %v579_v34, 0.0 }
  0xf9   : > { %587 = vst [vmem:[%s1573_s17 + $0x18] sm:$0xff] %v583_v36 }
  0xfa   : > { %1055 = vmatmul.msk.bf16.gmra.mxu2 %vm1053_vm5, %v1054_v35  ;;  %1061 = vmatmul.msk.bf16.gmra.mxu3 %vm1053_vm5, %v1054_v35 }
  0xfb   : > { %1308 = shalt.err (!%p1305_p10)
}
  0xfc   : > { %s1393_s8 = smov 128   ;;  %s1394_s17 = smov 8   ;;  %v606_v37 = vld [vmem:[%s1649_s5] sm:$0x3] }
  0xfd   : > { %1119 = dma.vmem_to_hbm [thread:$0]  (%p1509_p5), %s775_s20, 512, %s777_s10, %s744_s15, %s1393_s8, %s1393_s8, %s1394_s17   ;;  %v608_v38 = vperm.slane %v606_v37, 0  ;;  %v609_v39 = vperm.slane %v606_v37, 1 }
  0xfe   : > { %s1664_s1 = sshll.u32 %s1536_s16, 6  ;;  %s1106_s14 = sshll.u32 %s1461_s0, 6 }
  0xff   : > { %s311_s30 = scalar_lea.vmem [#allocation10], %s1664_s1  ;;  %s756_s15 = scalar_lea.hbm %s1650_s6, %s1106_s14 }
 0x100   : > { %s757_s13 = sshll.u32 %s311_s30, 4  ;;  %s759_s21 = sshll.u32 %s756_s15, 4  ;;  %s758_s13 = int_to_ptr.vmem [resolvable:$true] %s757_s13  ;;  %s760_s21 = int_to_ptr.hbm [resolvable:$true] %s759_s21 }
 0x101   : > { %s739_s0 = scalar_lea.sflag [#allocation6], %s1536_s16  ;;  %s1323_s22 = sshra.s32 %s760_s21, 4  ;;  %s1324_s22 = int_to_ptr.hbm [resolvable:$true] %s1323_s22 }
 0x102   : > { %s1325_s23 = scalar_lea.hbm %s1324_s22, 64  ;;  %s1329_s17 = scalar_lea.hbm %s1650_s6, 128 }
 0x103   : > { %p1326_p12 = scmp.ne.s32.totalorder %s1324_s22, %s1325_s23  ;;  %p1330_p3 = scmp.lt.s32.totalorder %s1324_s22, %s1650_s6 }
 0x104   : > { %p1331_p7 = scmp.lt.s32.totalorder %s1329_s17, %s1325_s23 }
 0x105   : > { %p1327_p13 = pnand %p1326_p12, %p1509_p5 }
 0x106   : > { %p1332_p1 = por %p1331_p7, %p1330_p3 }
 0x107   : > { %p1328_p0 = pneg %p1327_p13 }
 0x109   : > { %p1333_p4 = pnand %p1332_p1, %p1328_p0 }
 0x16d   : > { %v701_v40 = vpop.f32.mrf.mxu2  ;;  %v720_v41 = vpop.f32.mrf.mxu3 }
 0x16e   : > { %v702_v42 = vadd.f32 %v701_v40, %v608_v38  ;;  %v721_v43 = vadd.f32 %v720_v41, %v609_v39 }
 0x170   : > { %730 = vst [vmem:[%s311_s30] sm:$0xff] %v702_v42 }
 0x171   : > { %731 = vst [vmem:[%s311_s30 + $0x8] sm:$0xff] %v721_v43 }
 0x175   : > { %v703_v44 = vpop.f32.mrf.mxu2  ;;  %v722_v45 = vpop.f32.mrf.mxu3 }
 0x176   : > { %v704_v46 = vadd.f32 %v703_v44, %v608_v38  ;;  %v723_v47 = vadd.f32 %v722_v45, %v609_v39 }
 0x178   : > { %732 = vst [vmem:[%s311_s30 + $0x10] sm:$0xff] %v704_v46 }
 0x179   : > { %733 = vst [vmem:[%s311_s30 + $0x18] sm:$0xff] %v723_v47 }
 0x17d   : > { %v706_v48 = vpop.f32.mrf.mxu2  ;;  %v725_v49 = vpop.f32.mrf.mxu3 }
 0x17e   : > { %v707_v50 = vadd.f32 %v706_v48, %v608_v38  ;;  %v726_v51 = vadd.f32 %v725_v49, %v609_v39 }
 0x180   : > { %734 = vst [vmem:[%s311_s30 + $0x20] sm:$0xff] %v707_v50 }
 0x181   : > { %735 = vst [vmem:[%s311_s30 + $0x28] sm:$0xff] %v726_v51 }
 0x185   : > { %v708_v52 = vpop.f32.mrf.mxu2  ;;  %v727_v53 = vpop.f32.mrf.mxu3 }
 0x186   : > { %v709_v54 = vadd.f32 %v708_v52, %v608_v38  ;;  %v728_v55 = vadd.f32 %v727_v53, %v609_v39 }
 0x188   : > { %736 = vst [vmem:[%s311_s30 + $0x30] sm:$0xff] %v709_v54 }
 0x189   : > { %737 = vst [vmem:[%s311_s30 + $0x38] sm:$0xff] %v728_v55 }
 0x18a   : > { %1336 = shalt.err (!%p1333_p4)
}
 0x18b   : > { %s1395_s16 = smov 256   ;;  %s1396_s1 = smov 16  }
 0x18c   : > { %1118 = dma.vmem_to_hbm [thread:$0]  (%p1509_p5), %s758_s13, 1024, %s760_s21, %s739_s0, %s1395_s16, %s1395_s16, %s1396_s1  }
 0x18d PF: > { %s791_s30 = sand.u32 1, %s1371_s26   ;;  %p1665_p8 = scmp.ge.s32.totalorder %s1383_s29, 2 }
 0x18e   : > { %s792_s14 = scalar_lea.sflag [#allocation6], %s791_s30 }
 0x18f   : > { %p1134_p11 = pnand %p1665_p8, %p1475_p6 }
 0x191   : > { %p1135_p9 = pneg %p1134_p11 }
 0x193   : > { %1362 = dma.done.wait (%p1135_p9), %s792_s14, 1024  }
 0x194   : > { %1364 = vsyncadd (%p1135_p9), %s792_s14, 4294966272  ;;  %s802_s20 = scalar_lea.sflag [#allocation12], %s791_s30 }
 0x195   : > { %1366 = dma.done.wait (%p1135_p9), %s802_s20, 512  }
 0x196   : > { %1368 = vsyncadd (%p1135_p9), %s802_s20, 4294966784  ;;  %p26_p5 = scmp.ge.s32.totalorder %s1496_s25, 4   ;;  %s1666_s26 = smov %s1375_s27 }
 0x197   : > { %s1667_s27 = smov %s1379_s28  ;;  %s1668_s28 = smov %s1505_s11 }
 0x198   : > { %s1669_s29 = smov %s1496_s25  ;;  %28 = sbr.rel (!%p26_p5) target bundleno = 11 (0xb), region = 110 }
 0x19d   :  { %808 = vsyncpa [#allocation5], 1 }
 0x19e   :  { %810 = vsyncpa [#allocation5 + $0x1], 1 }
 0x19f   :  { %811 = vsyncpa [#allocation8], 1 }
 0x1a0   :  { %812 = vsyncpa [#allocation6], 1 }
 0x1a1   :  { %814 = vsyncpa [#allocation6 + $0x1], 1 }
 0x1a2   :  { %815 = vsyncpa [#allocation12], 1 }
 0x1a3   :  { %817 = vsyncpa [#allocation12 + $0x1], 1 }

</bundles_post_ra>
